<compile_context>
chip_gen: v7x
topology: tpu7x:2x2x1
jax: 0.10.0
libtpu: 0.0.40
codegen_flags: <defaults>
</compile_context>

<pallas_src>
import functools

import jax
import jax.numpy as jnp
import numpy as np
from jax.experimental import pallas as pl
from jax.experimental.pallas import tpu as pltpu


# ----------------------------------------------------------------------------
# planning helpers
# ----------------------------------------------------------------------------
def _round_up(v, m):
    return (v + m - 1) // m * m


def _pick_tile(total, candidates):
    for c in candidates:
        if total % c == 0:
            return c
    return total


@functools.lru_cache(maxsize=1)
def _vmem_limit_bytes():
    """Scoped-VMEM budget: ~half of physical (32 MiB on v7x, 64 MiB on v5e/v6e)."""
    cap = 64 * 1024 * 1024
    try:
        info = pltpu.get_tpu_info()
        cap = int(getattr(info, "vmem_capacity_bytes", cap)) or cap
    except Exception:
        pass
    return max(16 * 1024 * 1024, min(cap // 2, 96 * 1024 * 1024))


def _pick_rows(R, TL, vmem_limit, forced):
    """Rows per block: ~vmem/8 bytes per (TR, TL) f32 block; >=2 tiles when big."""
    if forced is not None:
        tr = max(8, (int(forced) // 8) * 8)
        return R if R <= tr else tr
    budget_elems = max((vmem_limit // 8) // 4, 8 * 128)
    cap = 16384 if vmem_limit >= 64 * 1024 * 1024 else 8192
    tr = min(max(8, (budget_elems // TL) // 8 * 8), cap)
    if R > tr:
        return tr
    if R >= 64:
        # split in two so the "parallel" row axis gives both v7x cores work
        return max(8, _round_up(pl.cdiv(R, 2), 8))
    return R


def _plan(B, D, block_rows=None):
    folded = (D <= 128) and (128 % D == 0)
    if folded:
        g = 128 // D                      # feature groups folded into one row
        L = 128
        R = pl.cdiv(B, g)
    else:
        g = 1
        L = _round_up(D, 128)
        R = B
    TL = _pick_tile(L, (2048, 1024, 512, 256, 128))
    vmem_limit = _vmem_limit_bytes()
    TR = _pick_rows(R, TL, vmem_limit, block_rows)
    R_pad = _round_up(R, TR)
    return dict(folded=folded, g=g, L=L, R_pad=R_pad, TL=TL, TR=TR,
                vmem_limit=vmem_limit)


def _to_view(x, plan):
    """(B, D) -> lane-dense (R_pad, L) view; zero rows padded at the end."""
    B, D = x.shape
    if plan["folded"]:
        rows = plan["R_pad"] * plan["g"]
        if rows != B:
            x = jnp.pad(x, ((0, rows - B), (0, 0)))
        return x.reshape(plan["R_pad"], plan["L"]), rows - B
    xv = x
    if plan["L"] != D:
        xv = jnp.pad(xv, ((0, 0), (0, plan["L"] - D)))
    if plan["R_pad"] != B:
        xv = jnp.pad(xv, ((0, plan["R_pad"] - B), (0, 0)))
    return xv, plan["R_pad"] - B


def _from_view(yv, plan, B, D):
    if plan["folded"]:
        return yv.reshape(plan["R_pad"] * plan["g"], D)[:B]
    return yv[:B, :D]


def _expand_stat(s, plan, D, fill):
    """(1, D) stat -> (1, L) lane view matching _to_view's layout."""
    s = jnp.asarray(s, jnp.float32).reshape(1, D)
    if plan["folded"]:
        return jnp.tile(s, (1, plan["g"]))
    if plan["L"] != D:
        return jnp.pad(s, ((0, 0), (0, plan["L"] - D)), constant_values=fill)
    return s


def _reduce_lane_groups(sums, plan, D):
    """(2, L) per-lane sums -> (2, D) per-feature sums."""
    if plan["folded"] and plan["g"] > 1:
        return sums.reshape(2, plan["g"], D).sum(axis=1)
    return sums[:, :D]


# ----------------------------------------------------------------------------
# pass 1: streamed shifted sum / sum-of-squares over the batch rows
# ----------------------------------------------------------------------------
def _stats_kernel(x_ref, mu0_ref, sums_ref):
    @pl.when(pl.program_id(2) == 0)
    def _():
        sums_ref[...] = jnp.zeros_like(sums_ref)

    xc = x_ref[...].astype(jnp.float32) - mu0_ref[...]
    # HBM-bound: the VPU/XLU column sums hide under the x DMA (no MXU path).
    s1 = jnp.sum(xc, axis=0, keepdims=True)
    s2 = jnp.sum(xc * xc, axis=0, keepdims=True)
    sums_ref[...] += jnp.concatenate([s1, s2], axis=0)[None, :, :]


def _batch_sums(xv, mu0_view, plan):
    """Per-lane shifted (sum, sumsq) over all rows of the view -> (2, L)."""
    R_pad, L = xv.shape
    TR, TL = plan["TR"], plan["TL"]
    n_tiles = R_pad // TR
    nsplit = 2 if (n_tiles >= 2 and n_tiles % 2 == 0) else 1
    n_per = n_tiles // nsplit
    sums = pl.pallas_call(
        _stats_kernel,
        out_shape=jax.ShapeDtypeStruct((nsplit, 2, L), jnp.float32),
        grid_spec=pltpu.PrefetchScalarGridSpec(
            num_scalar_prefetch=0,
            grid=(nsplit, L // TL, n_per),
            in_specs=[
                pl.BlockSpec((TR, TL), lambda s, j, i: (s * n_per + i, j)),
                pl.BlockSpec((1, TL), lambda s, j, i: (0, j)),
            ],
            out_specs=pl.BlockSpec((1, 2, TL), lambda s, j, i: (s, 0, j)),
        ),
        compiler_params=pltpu.CompilerParams(
            dimension_semantics=("parallel", "parallel", "arbitrary"),
            vmem_limit_bytes=plan["vmem_limit"],
        ),
    )(xv, mu0_view)
    return sums.sum(axis=0)


# ----------------------------------------------------------------------------
# pass 2: normalize   y = (x - mean) * 1/(std + eps)
# ----------------------------------------------------------------------------
def _normalize_kernel(x_ref, stats_ref, out_ref, *, eps, center):
    st = stats_ref[...]                               # packed (2, TL): mean, std
    inv = 1.0 / (st[1:2, :] + jnp.float32(eps))       # exact per-feature recip
    x = x_ref[...].astype(jnp.float32)
    y = (x - st[0:1, :]) * inv if center else x * inv
    out_ref[...] = y.astype(out_ref.dtype)


def _normalize_view(xv, stats2, plan, out_dtype, eps, center):
    R_pad, L = xv.shape
    TR, TL = plan["TR"], plan["TL"]
    kernel = functools.partial(_normalize_kernel, eps=eps, center=center)
    return pl.pallas_call(
        kernel,
        out_shape=jax.ShapeDtypeStruct((R_pad, L), out_dtype),
        grid_spec=pltpu.PrefetchScalarGridSpec(
            num_scalar_prefetch=0,
            # feature axis outer: the (2, TL) stats block is constant across
            # the inner row sweep and is not refetched each step.
            grid=(L // TL, R_pad // TR),
            in_specs=[
                pl.BlockSpec((TR, TL), lambda j, i: (i, j)),
                pl.BlockSpec((2, TL), lambda j, i: (0, j)),
            ],
            out_specs=pl.BlockSpec((TR, TL), lambda j, i: (i, j)),
        ),
        compiler_params=pltpu.CompilerParams(
            dimension_semantics=("parallel", "parallel"),
            vmem_limit_bytes=plan["vmem_limit"],
        ),
    )(xv, stats2)


# ----------------------------------------------------------------------------
# public wrappers (functional state; the torch module mutates buffers in place)
# ----------------------------------------------------------------------------
def empirical_norm_eval(x, mean, std, *, eps=0.01, center=True, block_rows=None):
    """Eval-mode forward: (x - mean) / (std + eps)."""
    B, D = x.shape
    plan = _plan(B, D, block_rows)
    xv, _ = _to_view(x, plan)
    stats2 = jnp.concatenate(
        [_expand_stat(mean, plan, D, 0.0), _expand_stat(std, plan, D, 1.0)], axis=0)
    yv = _normalize_view(xv, stats2, plan, x.dtype, eps, center)
    return _from_view(yv, plan, B, D)


def empirical_norm_train(x, mean, var, std, count, *, eps=0.01, until=None,
                         center=True, block_rows=None):
    """Training-mode forward: Welford update of (mean, var, std), then normalize.

    Returns (y, new_mean, new_var, new_std, new_count).
    """
    B, D = x.shape
    plan = _plan(B, D, block_rows)

    mean = jnp.asarray(mean, jnp.float32).reshape(1, D)
    var = jnp.asarray(var, jnp.float32).reshape(1, D)
    std = jnp.asarray(std, jnp.float32).reshape(1, D)
    cnt = jnp.asarray(count, jnp.int32).reshape((1,))

    xv, n_pad_rows = _to_view(x, plan)

    # Pass 1: per-feature sums of (x - running_mean) and (x - running_mean)^2.
    # TODO(synk): when frozen (count >= until) this pass still streams x once;
    # a scalar-prefetch gate could skip the arithmetic but not the HBM read,
    # so the freeze is handled by the jnp.where selection below instead.
    mu0_view = _expand_stat(mean, plan, D, 0.0)
    sums = _reduce_lane_groups(_batch_sums(xv, mu0_view, plan), plan, D)
    s1, s2 = sums[0:1, :], sums[1:2, :]
    if n_pad_rows:
        # each zero-padded row contributed (-mean, mean^2); remove exactly.
        s1 = s1 + n_pad_rows * mean
        s2 = s2 - n_pad_rows * mean * mean

    # Welford combine on (1, D) stats -- tiny per-feature glue in plain JAX.
    b_f = jnp.float32(B)
    count_f = cnt.astype(jnp.float32)
    new_count_f = count_f + b_f
    batch_mean = mean + s1 / b_f
    batch_var = jnp.maximum(s2 / b_f - (s1 / b_f) ** 2, 0.0)
    delta = batch_mean - mean
    upd_mean = mean + (b_f / new_count_f) * delta
    delta2 = batch_mean - upd_mean
    m2 = (var * count_f + batch_var * b_f
          + delta2 * delta2 * (count_f * b_f / new_count_f))
    upd_var = m2 / new_count_f            # reduces exactly to batch_var at count==0
    upd_std = jnp.sqrt(upd_var)

    if until is None:
        new_mean, new_var, new_std = upd_mean, upd_var, upd_std
        new_count = cnt + B
    else:
        do = cnt < until                   # frozen once count >= until
        new_mean = jnp.where(do, upd_mean, mean)
        new_var = jnp.where(do, upd_var, var)
        new_std = jnp.where(do, upd_std, std)
        new_count = jnp.where(do, cnt + B, cnt)

    # Pass 2: normalize with the (possibly frozen) stats.
    stats2 = jnp.concatenate(
        [_expand_stat(new_mean, plan, D, 0.0), _expand_stat(new_std, plan, D, 1.0)],
        axis=0)
    yv = _normalize_view(xv, stats2, plan, x.dtype, eps, center)
    y = _from_view(yv, plan, B, D)
    return y, new_mean, new_var, new_std, new_count


# ----------------------------------------------------------------------------
# numpy reference (mirrors the torch module) for correctness checking
# ----------------------------------------------------------------------------
def _ref_update(x, mean, var, count):
    x = x.astype(np.float64)
    b = x.shape[0]
    bm = x.mean(0, keepdims=True)
    nc = count + b
    delta = bm - mean
    nm = mean + b / nc * delta
    if count > 0:
        bv = ((x - bm) ** 2).mean(0, keepdims=True)
        d2 = bm - nm
        m2 = var * count + bv * b + d2 ** 2 * (count * b / nc)
        nv = m2 / nc
    else:
        nv = ((x - nm) ** 2).mean(0, keepdims=True)
    return nm, nv, np.sqrt(nv), nc


if __name__ == "__main__":
    eps = 0.01
    key = jax.random.PRNGKey(0)
    k1, k2, k3, k4, k5 = jax.random.split(key, 5)

    def check(got, want, tol):
        np.testing.assert_allclose(np.asarray(got, np.float64), want,
                                   rtol=tol, atol=tol)

    # ---- Test 1: D=32 (folded lane layout), B=8 ------------------------------
    B, D = 8, 32
    x1 = jax.random.normal(k1, (B, D), jnp.float32) * 2.0 + 1.0
    x2 = jax.random.normal(k2, (B, D), jnp.float32) * 0.5 - 3.0
    mean = jnp.zeros((1, D), jnp.float32)
    var = jnp.ones((1, D), jnp.float32)
    std = jnp.ones((1, D), jnp.float32)
    count = jnp.zeros((1,), jnp.int32)

    y1, mean, var, std, count = empirical_norm_train(x1, mean, var, std, count, eps=eps)
    y2, mean, var, std, count = empirical_norm_train(x2, mean, var, std, count, eps=eps)
    y3 = empirical_norm_eval(x1, mean, std, eps=eps)
    # frozen: `until` already exceeded -> stats and count must not move
    y4, mean4, var4, std4, count4 = empirical_norm_train(
        x1, mean, var, std, count, eps=eps, until=8)
    jax.block_until_ready((y1, y2, y3, y4, mean, var, std, count))

    rm, rv, rc = np.zeros((1, D)), np.ones((1, D)), 0
    x1n, x2n = np.asarray(x1, np.float64), np.asarray(x2, np.float64)
    rm, rv, rs, rc = _ref_update(x1n, rm, rv, rc)
    check(y1, (x1n - rm) / (rs + eps), 1e-5)
    rm, rv, rs, rc = _ref_update(x2n, rm, rv, rc)
    check(y2, (x2n - rm) / (rs + eps), 1e-5)
    check(y3, (x1n - rm) / (rs + eps), 1e-5)
    check(y4, (x1n - rm) / (rs + eps), 1e-5)
    check(mean, rm, 1e-5); check(var, rv, 1e-5); check(std, rs, 1e-5)
    check(mean4, rm, 1e-5); check(var4, rv, 1e-5); check(std4, rs, 1e-5)
    assert int(count[0]) == rc and int(count4[0]) == rc

    # ---- Test 2: B=1000 (needs zero-row padding), forced 64-row tiles --------
    # Exercises the multi-tile accumulator grid, the 2-way parallel split, the
    # padded-row correction with a nonzero running mean, and `until` not hit.
    B2, D2 = 1000, 32
    xa = jax.random.normal(k3, (B2, D2), jnp.float32) * 1.5 + 0.5
    xb = jax.random.normal(k4, (B2, D2), jnp.float32) * 0.3 - 2.0
    m = jnp.zeros((1, D2), jnp.float32); v = jnp.ones((1, D2), jnp.float32)
    s = jnp.ones((1, D2), jnp.float32); c = jnp.zeros((1,), jnp.int32)
    ya, m, v, s, c = empirical_norm_train(xa, m, v, s, c, eps=eps, block_rows=64)
    yb, m, v, s, c = empirical_norm_train(xb, m, v, s, c, eps=eps, until=1500,
                                          block_rows=64)
    jax.block_until_ready((ya, yb, m, v, s, c))

    rm, rv, rc = np.zeros((1, D2)), np.ones((1, D2)), 0
    xan, xbn = np.asarray(xa, np.float64), np.asarray(xb, np.float64)
    rm, rv, rs, rc = _ref_update(xan, rm, rv, rc)
    check(ya, (xan - rm) / (rs + eps), 1e-4)
    rm, rv, rs, rc = _ref_update(xbn, rm, rv, rc)
    check(yb, (xbn - rm) / (rs + eps), 1e-4)
    check(m, rm, 1e-4); check(v, rv, 1e-4); check(s, rs, 1e-4)
    assert int(c[0]) == rc

    # ---- Test 3: D=200 (lane-padded layout), B=16, center=False eval ---------
    B3, D3 = 16, 200
    xq = jax.random.normal(k5, (B3, D3), jnp.float32) * 2.0 + 1.0
    m3 = jnp.zeros((1, D3), jnp.float32); v3 = jnp.ones((1, D3), jnp.float32)
    s3 = jnp.ones((1, D3), jnp.float32); c3 = jnp.zeros((1,), jnp.int32)
    yq, m3, v3, s3, c3 = empirical_norm_train(xq, m3, v3, s3, c3, eps=eps)
    yr = empirical_norm_eval(xq, m3, s3, eps=eps, center=False)
    jax.block_until_ready((yq, yr, m3, v3, s3, c3))

    rm, rv, rc = np.zeros((1, D3)), np.ones((1, D3)), 0
    xqn = np.asarray(xq, np.float64)
    rm, rv, rs, rc = _ref_update(xqn, rm, rv, rc)
    check(yq, (xqn - rm) / (rs + eps), 1e-5)
    check(yr, xqn / (rs + eps), 1e-5)
    check(m3, rm, 1e-5); check(v3, rv, 1e-5); check(s3, rs, 1e-5)
    assert int(c3[0]) == rc

    print("KERNEL_OK")
</pallas_src>

<mosaic_0001>
module attributes {stable_mosaic.version = 11 : i64} {
  func.func @_stats_kernel(%arg0: i32, %arg1: i32, %arg2: i32, %arg3: memref<2x128xf32, #tpu.memory_space<vmem>>, %arg4: memref<1x128xf32, #tpu.memory_space<vmem>>, %arg5: memref<1x2x128xf32, #tpu.memory_space<vmem>>) attributes {dimension_semantics = [#tpu.dimension_semantics<parallel>, #tpu.dimension_semantics<parallel>, #tpu.dimension_semantics<arbitrary>], iteration_bounds = array<i64: 1, 1, 1>, scalar_prefetch = 0 : i64, scratch_operands = 0 : i64, tpu.core_type = #tpu.core_type<tc>, window_params = [{transform_indices = @transform_0, window_bounds = array<i64: 2, 128>}, {transform_indices = @transform_1, window_bounds = array<i64: 1, 128>}, {transform_indices = @transform_2, window_bounds = array<i64: 1, 2, 128>}]} {
    %c0_i32 = arith.constant 0 : i32
    %0 = arith.cmpi eq, %arg2, %c0_i32 : i32
    %1 = arith.extui %0 : i1 to i32
    %c0_i32_0 = arith.constant 0 : i32
    %2 = arith.cmpi ne, %1, %c0_i32_0 : i32
    scf.if %2 {
      %cst_11 = arith.constant 0.000000e+00 : f32
      %17 = vector.broadcast %cst_11 : f32 to vector<1x2x128xf32>
      %c0_12 = arith.constant 0 : index
      %c0_13 = arith.constant 0 : index
      %c0_14 = arith.constant 0 : index
      %18 = vector.load %arg5[%c0_12, %c0_13, %c0_14] : memref<1x2x128xf32, #tpu.memory_space<vmem>>, vector<1x2x128xf32>
      tpu.vector_store %arg5[%c0_12, %c0_13, %c0_14], %17 {strides = array<i32>} : memref<1x2x128xf32, #tpu.memory_space<vmem>>, vector<1x2x128xf32>,
    } else {
    }
    %c0 = arith.constant 0 : index
    %c0_1 = arith.constant 0 : index
    %3 = vector.load %arg3[%c0, %c0_1] : memref<2x128xf32, #tpu.memory_space<vmem>>, vector<2x128xf32>
    %c0_2 = arith.constant 0 : index
    %c0_3 = arith.constant 0 : index
    %4 = vector.load %arg4[%c0_2, %c0_3] : memref<1x128xf32, #tpu.memory_space<vmem>>, vector<1x128xf32>
    %5 = vector.broadcast %4 : vector<1x128xf32> to vector<2x128xf32>
    %6 = arith.subf %3, %5 : vector<2x128xf32>
    %cst = arith.constant dense<0.000000e+00> : vector<128xf32>
    %7 = vector.multi_reduction <add>, %6, %cst [0] : vector<2x128xf32> to vector<128xf32>
    %8 = vector.shape_cast %7 : vector<128xf32> to vector<1x128xf32>
    %9 = arith.mulf %6, %6 : vector<2x128xf32>
    %cst_4 = arith.constant dense<0.000000e+00> : vector<128xf32>
    %10 = vector.multi_reduction <add>, %9, %cst_4 [0] : vector<2x128xf32> to vector<128xf32>
    %11 = vector.shape_cast %10 : vector<128xf32> to vector<1x128xf32>
    %c0_5 = arith.constant 0 : index
    %c0_6 = arith.constant 0 : index
    %c0_7 = arith.constant 0 : index
    %12 = vector.load %arg5[%c0_5, %c0_6, %c0_7] : memref<1x2x128xf32, #tpu.memory_space<vmem>>, vector<1x2x128xf32>
    %13 = tpu.concatenate %8, %11 in 0 : vector<1x128xf32>, vector<1x128xf32> -> vector<2x128xf32>
    %14 = vector.shape_cast %13 : vector<2x128xf32> to vector<1x2x128xf32>
    %15 = arith.addf %12, %14 : vector<1x2x128xf32>
    %c0_8 = arith.constant 0 : index
    %c0_9 = arith.constant 0 : index
    %c0_10 = arith.constant 0 : index
    %16 = vector.load %arg5[%c0_8, %c0_9, %c0_10] : memref<1x2x128xf32, #tpu.memory_space<vmem>>, vector<1x2x128xf32>
    tpu.vector_store %arg5[%c0_8, %c0_9, %c0_10], %15 {strides = array<i32>} : memref<1x2x128xf32, #tpu.memory_space<vmem>>, vector<1x2x128xf32>,
    return
  }
  func.func @transform_0(%arg0: i32, %arg1: i32, %arg2: i32) -> (i32, i32) {
    %c1_i32 = arith.constant 1 : i32
    %0 = arith.muli %arg0, %c1_i32 : i32
    %1 = arith.addi %0, %arg2 : i32
    %c0_i32 = arith.constant 0 : i32
    return %1, %arg1 : i32, i32
  }
  func.func @transform_1(%arg0: i32, %arg1: i32, %arg2: i32) -> (i32, i32) {
    %c0_i32 = arith.constant 0 : i32
    %c0_i32_0 = arith.constant 0 : i32
    return %c0_i32, %arg1 : i32, i32
  }
  func.func @transform_2(%arg0: i32, %arg1: i32, %arg2: i32) -> (i32, i32, i32) {
    %c0_i32 = arith.constant 0 : i32
    %c0_i32_0 = arith.constant 0 : i32
    return %arg0, %c0_i32, %arg1 : i32, i32, i32
  }
}

</mosaic_0001>

<bundles_post_ra>
// kernel: tpu_custom_call.1
= control target key start
LH: loop header
LB: loop body
LE: loop exit
PB: predicated region body
PF: predicated region fallthrough
CT: control target
= control target key end

     0   :  { %7 = vsyncpa [#allocation3], 0  ;;  %s175_s0 = inlined_call_operand.hbm [shape: f32[2,128], index: 0, kind: input, shape index: {}]   ;;  %s176_s1 = inlined_call_operand.vmem [shape: f32[1,128], index: 1, kind: input, shape index: {}]   ;;  %s177_s2 = inlined_call_operand.hbm [shape: f32[1,2,128], index: 2, kind: output, shape index: {}]  }
   0x1   :  { %8 = vsyncpa [#allocation4], 0  ;;  %s130_s9 = smov [#allocation2]   ;;  %s82_s13 = scalar_lea.hbm %s175_s0, 32 }
   0x2   :  { %s18_s10 = sshll.u32 %s130_s9, 4  ;;  %p83_p0 = scmp.ne.s32.totalorder %s175_s0, %s82_s13  ;;  %s19_s10 = int_to_ptr.vmem [resolvable:$true] %s18_s10 }
   0x3   :  { %p86_p1 = scmp.lt.u32.totalorder %s82_s13, %s175_s0 }
   0x5   :  { %p88_p2 = pnand %p86_p1, %p83_p0 }
   0x7   :  { %91 = shalt.err (!%p88_p2)
}
   0x8   :  { %s92_s18 = scalar_lea.vmem %s19_s10, 32  ;;  %p97_p4 = scmp.lt.s32.totalorder %s19_s10, %s19_s10 }
   0x9   :  { %p93_p3 = scmp.ne.s32.totalorder %s19_s10, %s92_s18  ;;  %p98_p5 = scmp.lt.s32.totalorder %s92_s18, %s92_s18 }
   0xb   :  { %p99_p6 = por %p98_p5, %p97_p4 }
   0xd   :  { %p100_p7 = pnand %p99_p6, %p93_p3 }
   0xf   :  { %103 = shalt.err (!%p100_p7)
}
  0x10   :  { %21 = dma.hbm_to_vmem [thread:$0]  %s175_s0, 32, %s19_s10, [#allocation3]  }
  0x11   :  { %126 = dma.done.wait [#allocation3], 32  }
  0x12   :  { %127 = vsyncadd [#allocation3], 4294967264  ;;  %v131_v0 = vmov 0.0   ;;  %v33_v1 = vld [vmem:[#allocation2] sm:$0x3]  ;;  %vm42_vm0 = vcmask 1041408  }
  0x13   :  { %32 = vst [vmem:[#allocation5] sm:$0x3] %v131_v0  ;;  %v78_v2 = vld [vmem:[%s176_s1] ss:$0 sm:$0xff]  ;;  %vm59_vm1 = vcmask 1040384   ;;  %s132_s0 = smov [#allocation5]  }
  0x14   :  { %v41_v3 = vsub.f32 %v33_v1, %v78_v2  ;;  %s69_s1 = sshll.u32 %s132_s0, 4  ;;  %s70_s1 = int_to_ptr.vmem [resolvable:$true] %s69_s1 }
  0x15   :  { %s104_s23 = scalar_lea.vmem %s70_s1, 32  ;;  %p109_p9 = scmp.lt.s32.totalorder %s70_s1, %s70_s1 }
  0x16   :  { %v43_v4 = vsel %vm42_vm0, %v41_v3, 0.0  ;;  %v50_v5 = vmul.f32 %v41_v3, %v41_v3  ;;  %p105_p8 = scmp.ne.s32.totalorder %s70_s1, %s104_s23  ;;  %p110_p10 = scmp.lt.s32.totalorder %s104_s23, %s104_s23 }
  0x17   :  { %v44_v6 = vrot.slane %v43_v4, 4 }
  0x18   :  { %v51_v7 = vsel %vm42_vm0, %v50_v5, 0.0  ;;  %p111_p11 = por %p110_p10, %p109_p9 }
  0x19   :  { %v45_v8 = vadd.f32 %v44_v6, %v43_v4  ;;  %v52_v9 = vrot.slane %v51_v7, 4 }
  0x1a   :  { %v58_v19 = vld [vmem:[#allocation5] sm:$0x3]  ;;  %p112_p12 = pnand %p111_p11, %p105_p8 }
  0x1b   :  { %v46_v10 = vrot.slane %v45_v8, 2  ;;  %v53_v11 = vadd.f32 %v52_v9, %v51_v7 }
  0x1d   :  { %v47_v12 = vadd.f32 %v46_v10, %v45_v8  ;;  %v54_v13 = vrot.slane %v53_v11, 2 }
  0x1f   :  { %v48_v14 = vrot.slane %v47_v12, 1  ;;  %v55_v15 = vadd.f32 %v54_v13, %v53_v11 }
  0x21   :  { %v49_v16 = vadd.f32 %v48_v14, %v47_v12  ;;  %v56_v17 = vrot.slane %v55_v15, 1 }
  0x23   :  { %v57_v18 = vadd.f32 %v56_v17, %v55_v15 }
  0x25   :  { %v60_v20 = vsel %vm59_vm1, %v49_v16, %v57_v18 }
  0x26   :  { %v61_v21 = vadd.f32 %v60_v20, %v58_v19 }
  0x28   :  { %62 = vst [vmem:[#allocation5] sm:$0x3] %v61_v21 }
  0x29   :  { %115 = shalt.err (!%p112_p12)
}
  0x2a   :  { %s116_s26 = scalar_lea.hbm %s177_s2, 32 }
  0x2b   :  { %p117_p13 = scmp.ne.s32.totalorder %s177_s2, %s116_s26  ;;  %p120_p0 = scmp.lt.u32.totalorder %s116_s26, %s177_s2 }
  0x2d   :  { %p122_p1 = pnand %p120_p0, %p117_p13 }
  0x2f   :  { %125 = shalt.err (!%p122_p1)
}
  0x30   :  { %72 = dma.vmem_to_hbm [thread:$0]  %s70_s1, 32, %s177_s2, [#allocation4]  }
  0x31   :  { %128 = dma.done.wait [#allocation4], 32  }
  0x32   :  { %129 = vsyncadd [#allocation4], 4294967264 }
  0x33   :  { %76 = vsyncpa [#allocation3], 1 }
  0x34   :  { %77 = vsyncpa [#allocation4], 1 }

</bundles_post_ra>
